<compile_context>
chip_gen: v7x
topology: tpu7x:2x2x1
jax: 0.10.0
libtpu: 0.0.40
codegen_flags: <defaults>
</compile_context>

<pallas_src>
from functools import partial

import jax
import jax.numpy as jnp
import numpy as np
from jax import lax
from jax.experimental import pallas as pl
from jax.experimental.pallas import tpu as pltpu


# ----------------------------------------------------------------------------
# helpers
# ----------------------------------------------------------------------------
def _row_tile(M, target=512):
    """Largest row tile <= target that evenly divides M (multiple of 8 unless == M)."""
    if M <= target:
        return M
    t = target
    while t >= 8:
        if M % t == 0:
            return t
        t //= 2
    return M


def _choose_q_tile(N, C, budget_bytes=2 << 20):
    """Query tile so the (Tq, N, C) f32 relation block stays under `budget_bytes`."""
    row_bytes = N * C * 4
    if N * row_bytes <= budget_bytes:
        return N
    divisors = [t for t in range(8, N, 8) if N % t == 0]
    fitting = [t for t in divisors if t * row_bytes <= budget_bytes]
    if fitting:
        return max(fitting)
    if divisors:
        return min(divisors)
    return N


# ----------------------------------------------------------------------------
# Row-tiled linear kernel:  y = x @ W_t + b   (lane-dense output, M "parallel")
# ----------------------------------------------------------------------------
def _linear_kernel(x_ref, w_ref, b_ref, o_ref):
    acc = jnp.dot(x_ref[...], w_ref[...], preferred_element_type=jnp.float32)
    o_ref[...] = (acc + b_ref[...]).astype(o_ref.dtype)


def linear(x2d, weight, bias=None):
    """PyTorch-style Linear: x2d (M, K), weight (O, K), bias (O,) or None."""
    M, K = x2d.shape
    O = weight.shape[0]
    if bias is None:
        bias = jnp.zeros((O,), x2d.dtype)
    tm = _row_tile(M)
    return pl.pallas_call(
        _linear_kernel,
        out_shape=jax.ShapeDtypeStruct((M, O), x2d.dtype),
        grid=(M // tm,),
        in_specs=[
            pl.BlockSpec((tm, K), lambda i: (i, 0)),
            pl.BlockSpec((K, O), lambda i: (0, 0)),
            pl.BlockSpec((1, O), lambda i: (0, 0)),
        ],
        out_specs=pl.BlockSpec((tm, O), lambda i: (i, 0)),
        compiler_params=pltpu.CompilerParams(dimension_semantics=("parallel",)),
    )(x2d, weight.T, bias.reshape(1, O))


# ----------------------------------------------------------------------------
# Fused attention kernel — one (batch, query-tile) grid step.
#   scores = (J_q J_k^T + rf @ W_conv + <rf @ W_Rq, rf @ W_Rk>) * scale
#   out    = softmax(scores) @ J_v            (heads concatenated on lanes)
# ----------------------------------------------------------------------------
def _fused_attn_kernel(scale, H, HS, Tq, jqkv_ref, rel_ref, wrel_ref, o_ref):
    C = H * HS
    N = jqkv_ref.shape[0]
    qi = pl.program_id(1)

    # joint q/k/v rows, channels-last (heads are static lane slices)
    q_start = pl.multiple_of(qi * Tq, Tq)
    q_rows = jqkv_ref[pl.ds(q_start, Tq), :].astype(jnp.float32)     # (Tq, 3C)
    kv_rows = jqkv_ref[...].astype(jnp.float32)                      # (N, 3C)
    jq = q_rows[:, :C]
    jk = kv_rows[:, C:2 * C]
    jv = kv_rows[:, 2 * C:]

    # fused relation projection: one lane-dense matmul against (C, 2C + H)
    rel = rel_ref[...].astype(jnp.float32)                           # (Tq, N, C)
    rel2d = rel.reshape(Tq * N, C)
    rproj = jnp.dot(rel2d, wrel_ref[...].astype(jnp.float32),
                    preferred_element_type=jnp.float32)              # (Tq*N, 2C+H)
    rproj = rproj.reshape(Tq, N, 2 * C + H)
    prod = rproj[:, :, :C] * rproj[:, :, C:2 * C]                    # (Tq, N, C)
    conv = rproj[:, :, 2 * C:]                                       # (Tq, N, H)

    outs = []
    for h in range(H):                                   # static unroll, H small
        lo, hi = h * HS, (h + 1) * HS
        # joint scores: contract head dim of both operands (no explicit .T)
        attn_j = lax.dot_general(jq[:, lo:hi], jk[:, lo:hi],
                                 (((1,), (1,)), ((), ())),
                                 preferred_element_type=jnp.float32)  # (Tq, N)
        # relation scores: per-(i,j) dot over the head dim + linear term
        s_rel = (jnp.sum(prod[:, :, lo:hi], axis=-1)
                 + jnp.sum(conv[:, :, h:h + 1], axis=-1))             # (Tq, N)
        s = (attn_j + s_rel) * scale

        # numerically stable softmax over keys
        s = s - jnp.max(s, axis=-1, keepdims=True)
        p = jnp.exp(s)
        p = p * pl.reciprocal(jnp.sum(p, axis=-1, keepdims=True))

        outs.append(jnp.dot(p, jv[:, lo:hi],
                            preferred_element_type=jnp.float32))      # (Tq, HS)

    # single lane-dense (Tq, C) store with heads concatenated on the channel axis
    o_ref[...] = jnp.concatenate(outs, axis=-1).astype(o_ref.dtype)


def attention_forward(joint_feature, relation_feature, params, num_heads):
    B, N, C = joint_feature.shape
    H = num_heads
    HS = C // H
    scale = HS ** -0.5

    # joint qkv projection — stays channels-last, no head transposes
    j_qkv = linear(joint_feature.reshape(B * N, C),
                   params["J_qkv_w"]).reshape(B, N, 3 * C)

    # fused relation weight (C, 2C+H): cols [0:C)=R_q, [C:2C)=R_k, [2C:)=R_conv
    w_rel = jnp.concatenate([params["R_qk_w"], params["R_conv_w"]], axis=0).T

    Tq = _choose_q_tile(N, C)
    grid = (B, N // Tq)

    flops = (2 * B * N * N * C * (2 * C + H)   # fused relation projection
             + 3 * B * N * N * C               # elementwise product + reduces
             + 4 * B * N * N * C)              # q k^T and attn @ v
    bytes_accessed = 4 * (relation_feature.size
                          + B * N * 3 * C * (N // Tq)
                          + w_rel.size
                          + B * N * C)

    out = pl.pallas_call(
        partial(_fused_attn_kernel, scale, H, HS, Tq),
        out_shape=jax.ShapeDtypeStruct((B, N, C), joint_feature.dtype),
        grid=grid,
        in_specs=[
            pl.BlockSpec((None, N, 3 * C), lambda b, qi: (b, 0, 0)),
            pl.BlockSpec((None, Tq, N, C), lambda b, qi: (b, qi, 0, 0)),
            pl.BlockSpec((C, 2 * C + H), lambda b, qi: (0, 0)),
        ],
        out_specs=pl.BlockSpec((None, Tq, C), lambda b, qi: (b, qi, 0)),
        compiler_params=pltpu.CompilerParams(
            dimension_semantics=("parallel", "parallel"),
            vmem_limit_bytes=64 * 1024 * 1024),
        cost_estimate=pl.CostEstimate(
            flops=int(flops),
            transcendentals=int(B * H * N * N),
            bytes_accessed=int(bytes_accessed)),
    )(j_qkv, relation_feature, w_rel)

    # output projection — input/output already lane-dense (B, N, C)
    x = linear(out.reshape(B * N, C), params["proj_w"],
               params["proj_b"]).reshape(B, N, C)
    return x


# ----------------------------------------------------------------------------
# Pure-JAX reference (mirrors the PyTorch forward) for a correctness check.
# ----------------------------------------------------------------------------
def reference_forward(jf, rf, params, num_heads):
    B, N, C = jf.shape
    H = num_heads
    HS = C // H
    scale = HS ** -0.5
    j_qkv = (jf @ params["J_qkv_w"].T).reshape(B, N, 3, H, HS).transpose(2, 0, 3, 1, 4)
    J_q, J_k, J_v = j_qkv[0], j_qkv[1], j_qkv[2]
    r_qk = (rf @ params["R_qk_w"].T).reshape(B, N, N, 2, H, HS).transpose(3, 0, 4, 1, 2, 5)
    R_q, R_k = r_qk[0], r_qk[1]
    attn_J = jnp.einsum("bhnd,bhmd->bhnm", J_q, J_k)
    attn_R_linear = (rf @ params["R_conv_w"].T).reshape(B, N, N, H).transpose(0, 3, 1, 2)
    attn_R_qurt = jnp.sum(R_q * R_k, axis=-1)
    attn = (attn_J + attn_R_linear + attn_R_qurt) * scale
    attn = jax.nn.softmax(attn, axis=-1)
    x = jnp.einsum("bhnm,bhmd->bhnd", attn, J_v).transpose(0, 2, 1, 3).reshape(B, N, C)
    return x @ params["proj_w"].T + params["proj_b"]


if __name__ == "__main__":
    B, N, C, H = 2, 8, 32, 8   # dim=32, num_heads=8 -> head_dim=4

    key = jax.random.PRNGKey(0)
    ks = jax.random.split(key, 7)

    # deterministic synthetic parameters (PyTorch Linear weight shape = (out, in))
    def init_w(k, out_f, in_f):
        bound = 1.0 / np.sqrt(in_f)
        return jax.random.uniform(k, (out_f, in_f), jnp.float32, -bound, bound)

    params = {
        "J_qkv_w": init_w(ks[0], 3 * C, C),   # qkv_bias=False
        "R_conv_w": init_w(ks[1], H, C),      # qkv_bias=False
        "R_qk_w": init_w(ks[2], 2 * C, C),    # qkv_bias=False
        "proj_w": init_w(ks[3], C, C),
        "proj_b": jax.random.uniform(ks[4], (C,), jnp.float32,
                                     -1.0 / np.sqrt(C), 1.0 / np.sqrt(C)),
    }

    joint_feature = jax.random.normal(ks[5], (B, N, C), jnp.float32)
    relation_feature = jax.random.normal(ks[6], (B, N, N, C), jnp.float32)

    out = attention_forward(joint_feature, relation_feature, params, num_heads=H)
    out = jax.block_until_ready(out)

    ref = reference_forward(joint_feature, relation_feature, params, num_heads=H)
    np.testing.assert_allclose(np.asarray(out), np.asarray(ref), rtol=1e-4, atol=1e-4)

    print("KERNEL_OK")
</pallas_src>

<mosaic_0001>
module attributes {stable_mosaic.version = 11 : i64} {
  func.func @_linear_kernel(%arg0: i32, %arg1: memref<16x32xf32, #tpu.memory_space<vmem>>, %arg2: memref<32x96xf32, #tpu.memory_space<vmem>>, %arg3: memref<1x96xf32, #tpu.memory_space<vmem>>, %arg4: memref<16x96xf32, #tpu.memory_space<vmem>>) attributes {dimension_semantics = [#tpu.dimension_semantics<parallel>], iteration_bounds = array<i64: 1>, scalar_prefetch = 0 : i64, scratch_operands = 0 : i64, tpu.core_type = #tpu.core_type<tc>, window_params = [{transform_indices = @transform_0, window_bounds = array<i64: 16, 32>}, {pipeline_mode = #tpu.pipeline_mode<synchronous>, transform_indices = @transform_1, window_bounds = array<i64: 32, 96>}, {pipeline_mode = #tpu.pipeline_mode<synchronous>, transform_indices = @transform_2, window_bounds = array<i64: 1, 96>}, {transform_indices = @transform_3, window_bounds = array<i64: 16, 96>}]} {
    %c0 = arith.constant 0 : index
    %c0_0 = arith.constant 0 : index
    %0 = vector.load %arg1[%c0, %c0_0] : memref<16x32xf32, #tpu.memory_space<vmem>>, vector<16x32xf32>
    %c0_1 = arith.constant 0 : index
    %c0_2 = arith.constant 0 : index
    %1 = vector.load %arg2[%c0_1, %c0_2] : memref<32x96xf32, #tpu.memory_space<vmem>>, vector<32x96xf32>
    %cst = arith.constant dense<0.000000e+00> : vector<16x96xf32>
    %2 = tpu.matmul %0, %1, %cst {dimension_numbers = #tpu.dot_dimension_numbers<[1], [0], [0], [1], [0, 0, 1, 1], [], []>} : vector<16x32xf32>, vector<32x96xf32>, vector<16x96xf32> -> vector<16x96xf32>
    %c0_3 = arith.constant 0 : index
    %c0_4 = arith.constant 0 : index
    %3 = vector.load %arg3[%c0_3, %c0_4] : memref<1x96xf32, #tpu.memory_space<vmem>>, vector<1x96xf32>
    %4 = vector.broadcast %3 : vector<1x96xf32> to vector<16x96xf32>
    %5 = arith.addf %2, %4 : vector<16x96xf32>
    %c0_5 = arith.constant 0 : index
    %c0_6 = arith.constant 0 : index
    %6 = vector.load %arg4[%c0_5, %c0_6] : memref<16x96xf32, #tpu.memory_space<vmem>>, vector<16x96xf32>
    tpu.vector_store %arg4[%c0_5, %c0_6], %5 {strides = array<i32>} : memref<16x96xf32, #tpu.memory_space<vmem>>, vector<16x96xf32>,
    return
  }
  func.func @transform_0(%arg0: i32) -> (i32, i32) {
    %c0_i32 = arith.constant 0 : i32
    %c0_i32_0 = arith.constant 0 : i32
    return %arg0, %c0_i32 : i32, i32
  }
  func.func @transform_1(%arg0: i32) -> (i32, i32) {
    %c0_i32 = arith.constant 0 : i32
    %c0_i32_0 = arith.constant 0 : i32
    %c0_i32_1 = arith.constant 0 : i32
    return %c0_i32, %c0_i32_0 : i32, i32
  }
  func.func @transform_2(%arg0: i32) -> (i32, i32) {
    %c0_i32 = arith.constant 0 : i32
    %c0_i32_0 = arith.constant 0 : i32
    %c0_i32_1 = arith.constant 0 : i32
    return %c0_i32, %c0_i32_0 : i32, i32
  }
  func.func @transform_3(%arg0: i32) -> (i32, i32) {
    %c0_i32 = arith.constant 0 : i32
    %c0_i32_0 = arith.constant 0 : i32
    return %arg0, %c0_i32 : i32, i32
  }
}

</mosaic_0001>

<bundles_post_ra>
// kernel: tpu_custom_call.1
= control target key start
LH: loop header
LB: loop body
LE: loop exit
PB: predicated region body
PF: predicated region fallthrough
CT: control target
= control target key end

     0   :  { %8 = vsyncpa [#allocation3], 0  ;;  %s337_s0 = inlined_call_operand.hbm [shape: f32[16,32], index: 0, kind: input, shape index: {}]   ;;  %s338_s1 = inlined_call_operand.hbm [shape: f32[32,96], index: 1, kind: input, shape index: {}]   ;;  %s339_s2 = inlined_call_operand.vmem [shape: f32[1,96], index: 2, kind: input, shape index: {}]   ;;  %s340_s3 = inlined_call_operand.hbm [shape: f32[16,96], index: 3, kind: output, shape index: {}]  }
   0x1   :  { %9 = vsyncpa [#allocation6], 0 }
   0x2   :  { %10 = vsyncpa [#allocation4], 0  ;;  %s264_s12 = smov [#allocation2]   ;;  %s192_s16 = scalar_lea.hbm %s337_s0, 256 }
   0x3   :  { %s16_s13 = sshll.u32 %s264_s12, 4  ;;  %p193_p0 = scmp.ne.s32.totalorder %s337_s0, %s192_s16  ;;  %s17_s13 = int_to_ptr.vmem [resolvable:$true] %s16_s13 }
   0x4   :  { %p196_p1 = scmp.lt.u32.totalorder %s192_s16, %s337_s0 }
   0x6   :  { %p198_p2 = pnand %p196_p1, %p193_p0 }
   0x8   :  { %201 = shalt.err (!%p198_p2)
}
   0x9   :  { %s202_s21 = scalar_lea.vmem %s17_s13, 256  ;;  %p207_p4 = scmp.lt.s32.totalorder %s17_s13, %s17_s13 }
   0xa   :  { %p203_p3 = scmp.ne.s32.totalorder %s17_s13, %s202_s21  ;;  %p208_p5 = scmp.lt.s32.totalorder %s202_s21, %s202_s21 }
   0xc   :  { %p209_p6 = por %p208_p5, %p207_p4 }
   0xe   :  { %p210_p7 = pnand %p209_p6, %p203_p3 }
  0x10   :  { %213 = shalt.err (!%p210_p7)
}
  0x11   :  { %s265_s22 = smov 128   ;;  %s266_s23 = smov 8  }
  0x12   :  { %22 = dma.hbm_to_vmem [thread:$0]  %s337_s0, 256, %s17_s13, [#allocation3], %s265_s22, %s265_s22, %s266_s23  }
  0x13   :  { %s267_s26 = smov [#allocation5]   ;;  %s214_s30 = scalar_lea.hbm %s338_s1, 512 }
  0x14   :  { %s28_s27 = sshll.u32 %s267_s26, 4  ;;  %p215_p8 = scmp.ne.s32.totalorder %s338_s1, %s214_s30  ;;  %s29_s27 = int_to_ptr.vmem [resolvable:$true] %s28_s27 }
  0x15   :  { %p218_p9 = scmp.lt.u32.totalorder %s214_s30, %s338_s1 }
  0x17   :  { %p220_p10 = pnand %p218_p9, %p215_p8 }
  0x19   :  { %223 = shalt.err (!%p220_p10)
}
  0x1a   :  { %s224_s8 = scalar_lea.vmem %s29_s27, 512  ;;  %p229_p12 = scmp.lt.s32.totalorder %s29_s27, %s29_s27 }
  0x1b   :  { %p225_p11 = scmp.ne.s32.totalorder %s29_s27, %s224_s8  ;;  %p230_p13 = scmp.lt.s32.totalorder %s224_s8, %s224_s8 }
  0x1d   :  { %p231_p0 = por %p230_p13, %p229_p12 }
  0x1f   :  { %p232_p1 = pnand %p231_p0, %p225_p11 }
  0x21   :  { %235 = shalt.err (!%p232_p1)
}
  0x22   :  { %34 = dma.hbm_to_vmem [thread:$0]  %s338_s1, 512, %s29_s27, [#allocation6], %s265_s22, %s265_s22, %s266_s23  }
  0x23   :  { %258 = dma.done.wait [#allocation3], 256  }
  0x24   :  { %259 = vsyncadd [#allocation3], 4294967040 }
  0x25   :  { %260 = dma.done.wait [#allocation6], 512  }
  0x26   :  { %261 = vsyncadd [#allocation6], 4294966784  ;;  %vm56_vm0 = vcmask 261120   ;;  %v45_v0 = vld [vmem:[#allocation5] sm:$0xff]  ;;  %v46_v1 = vld [vmem:[#allocation5 + $0x8] sm:$0xff]  ;;  %s268_s11 = smov [#allocation7]  }
  0x27   :  { %v47_v2 = vld [vmem:[#allocation5 + $0x10] sm:$0xff]  ;;  %v179_v3 = vpack.c.bf16 %v46_v1, %v45_v0  ;;  %v48_v4 = vld [vmem:[#allocation5 + $0x18] sm:$0xff]  ;;  %s146_s12 = sshll.u32 %s268_s11, 4  ;;  %vm138_vm1 = vcmask 785408   ;;  %s147_s12 = int_to_ptr.vmem [resolvable:$true] %s146_s12 }
  0x28   :  { %v43_v5 = vld [vmem:[#allocation2] sm:$0xff]  ;;  %v183_v6 = vpack.c.bf16 %v48_v4, %v47_v2  ;;  %v44_v7 = vld [vmem:[#allocation2 + $0x8] sm:$0xff]  ;;  %s236_s13 = scalar_lea.vmem %s147_s12, 256  ;;  %p241_p3 = scmp.lt.s32.totalorder %s147_s12, %s147_s12 }
  0x29   :  { %176 = vmatprep.mubr.msk.f32.mxu0 %vm56_vm0, %v43_v5  ;;  %180 = vmatprep.subr.bf16.mxu0 %v179_v3  ;;  %v159_v8 = vld [vmem:[%s339_s2] ss:$0 sm:$0xff]  ;;  %p237_p2 = scmp.ne.s32.totalorder %s147_s12, %s236_s13  ;;  %p242_p4 = scmp.lt.s32.totalorder %s236_s13, %s236_s13 }
  0x2a   :  { %182 = vmatpush3.bf16.msra.mxu0 %v179_v3 }
  0x2b   :  { %184 = vmatprep.subr.bf16.mxu0 %v183_v6  ;;  %p243_p5 = por %p242_p4, %p241_p3 }
  0x2d   :  { %p244_p6 = pnand %p243_p5, %p237_p2 }
  0x2e   :  { %186 = vmatpush3.bf16.msra.mxu0 %v183_v6 }
  0x31   :  { %177 = vmatmul.mubr.msk.f32.vlgmr.msra.gmra.mrb[0].mxu0 %vm56_vm0, %v44_v7 }
 0x104   :  { %v178_v9 = vpop.f32.mrb[0].mxu0 }
 0x105   :  { %v135_v10 = vadd.f32 %v178_v9, %v159_v8  ;;  %v129_v11 = vpop.f32.mrb[1].mxu0 }
 0x106   :  { %v130_v12 = vadd.f32 %v159_v8, %v129_v11 }
 0x107   :  { %140 = vst.msk [vmem:[#allocation7 + $0x8] sm:$0xff] %vm138_vm1, %v135_v10 }
 0x108   :  { %139 = vst.msk [vmem:[#allocation7] sm:$0xff] %vm138_vm1, %v130_v12 }
 0x109   :  { %247 = shalt.err (!%p244_p6)
}
 0x10a   :  { %s248_s2 = scalar_lea.hbm %s340_s3, 256 }
 0x10b   :  { %p249_p7 = scmp.ne.s32.totalorder %s340_s3, %s248_s2  ;;  %p252_p8 = scmp.lt.u32.totalorder %s248_s2, %s340_s3 }
 0x10d   :  { %p254_p9 = pnand %p252_p8, %p249_p7 }
 0x10f   :  { %257 = shalt.err (!%p254_p9)
}
 0x110   :  { %152 = dma.vmem_to_hbm [thread:$0]  %s147_s12, 256, %s340_s3, [#allocation4], %s265_s22, %s265_s22, %s266_s23  }
 0x111   :  { %262 = dma.done.wait [#allocation4], 256  }
 0x112   :  { %263 = vsyncadd [#allocation4], 4294967040 }
 0x113   :  { %156 = vsyncpa [#allocation3], 1 }
 0x114   :  { %157 = vsyncpa [#allocation6], 1 }
 0x115   :  { %158 = vsyncpa [#allocation4], 1 }

</bundles_post_ra>
